<compile_context>
chip_gen: v7x
topology: tpu7x:2x2x1
jax: 0.10.0
libtpu: 0.0.40
codegen_flags: <defaults>
</compile_context>

<pallas_src>
import jax
import jax.numpy as jnp
from jax.experimental import pallas as pl
from jax.experimental.pallas import tpu as pltpu

# ---- static configuration (mirrors __init__: n_transforms flows, n_marks) ----
N_TRANSFORMS = 3
N_MARKS = 4

# Default tile sizes (rows must be a multiple of 8, cols a multiple of 128).
TILE_B = 256
TILE_N = 1024


def _round_up(x, m):
    return ((x + m - 1) // m) * m


def _forward_kernel(y_ref, k_ref, scale_ref, shift_ref, out_ref):
    """Applies the composed flow stack (single per-mark affine) to one tile.

    y_ref, k_ref, out_ref : (TB, TN) blocks in VMEM
    scale_ref, shift_ref  : (N_MARKS,) composed parameters in SMEM
    """
    y = y_ref[...]
    k = k_ref[...]
    # Identity for padded / out-of-range marks (k == n_marks).
    s = jnp.ones_like(y)
    b = jnp.zeros_like(y)
    # One compare + two selects per mark; masks computed exactly once.
    for m in range(N_MARKS):
        mask = k == m
        s = jnp.where(mask, scale_ref[m], s)
        b = jnp.where(mask, shift_ref[m], b)
    out_ref[...] = s * y + b


def transformed_exponential_forward(y, k, scale, shift, *,
                                    tile_b=TILE_B, tile_n=TILE_N):
    """Wrapper: y (B,N) f32, k (B,N) i32, scale/shift (L,M) f32 -> (B,N) f32.

    Composes the L transforms into a single per-mark affine, pads the inputs
    to tile multiples, and runs a tiled, pipelined elementwise kernel.
    """
    B, N = y.shape
    L = scale.shape[0]

    # ---- compose the L affine transforms (done once, in the wrapper) ----
    # y_out = s_L * ( ... (s_1 * y + b_1) ... ) + b_L
    #       = (prod_l s_l) * y + fold_l(b)
    total_scale = jnp.ones((N_MARKS,), jnp.float32)
    total_shift = jnp.zeros((N_MARKS,), jnp.float32)
    for l in range(L):
        total_scale = scale[l] * total_scale
        total_shift = scale[l] * total_shift + shift[l]

    # ---- tile sizing: sublane-aligned rows, lane-dense (x128) columns ----
    tb = min(tile_b, _round_up(B, 8))
    tn = min(tile_n, _round_up(N, 128))
    Bp = _round_up(B, tb)
    Np = _round_up(N, tn)

    y_p = jnp.pad(y.astype(jnp.float32), ((0, Bp - B), (0, Np - N)))
    # Padded events carry mark == n_marks -> identity in the kernel.
    k_p = jnp.pad(k.astype(jnp.int32), ((0, Bp - B), (0, Np - N)),
                  constant_values=N_MARKS)

    grid = (Bp // tb, Np // tn)

    out_p = pl.pallas_call(
        _forward_kernel,
        out_shape=jax.ShapeDtypeStruct((Bp, Np), jnp.float32),
        grid=grid,
        in_specs=[
            pl.BlockSpec((tb, tn), lambda i, j: (i, j)),                 # y
            pl.BlockSpec((tb, tn), lambda i, j: (i, j)),                 # k
            pl.BlockSpec(memory_space=pltpu.MemorySpace.SMEM),           # scale
            pl.BlockSpec(memory_space=pltpu.MemorySpace.SMEM),           # shift
        ],
        out_specs=pl.BlockSpec((tb, tn), lambda i, j: (i, j)),
        compiler_params=pltpu.CompilerParams(
            dimension_semantics=("parallel", "parallel")),
    )(y_p, k_p, total_scale, total_shift)

    return out_p[:B, :N]


def _reference_forward(y, k, scale, shift):
    """Pure-JAX reference replicating the PyTorch composition semantics.

    Marks outside [0, n_marks) (i.e. padding == n_marks) pass through as
    identity, matching the kernel convention.
    """
    out = y
    valid = (k >= 0) & (k < N_MARKS)
    k_safe = jnp.where(valid, k, 0)
    for l in range(scale.shape[0]):
        s = jnp.where(valid, scale[l][k_safe], 1.0)
        b = jnp.where(valid, shift[l][k_safe], 0.0)
        out = s * out + b
    return out


if __name__ == "__main__":
    key = jax.random.PRNGKey(0)
    k_y, k_k, k_sc, k_sh = jax.random.split(key, 4)

    # Deterministic synthetic flow parameters (one (scale, shift) pair per
    # transform and per mark), constrained positive as a monotone flow needs.
    scale = jnp.exp(0.3 * jax.random.normal(k_sc, (N_TRANSFORMS, N_MARKS),
                                            dtype=jnp.float32))
    shift = jax.nn.softplus(jax.random.normal(k_sh, (N_TRANSFORMS, N_MARKS),
                                              dtype=jnp.float32))

    # --- test 1: module-scale shapes (batch=2, seq=8) ---
    B, N = 2, 8
    y = jax.random.exponential(k_y, (B, N), dtype=jnp.float32)
    k = jax.random.randint(k_k, (B, N), 0, N_MARKS, dtype=jnp.int32)
    k = k.at[:, -2:].set(N_MARKS)  # padded events carry mark == n_marks

    out = transformed_exponential_forward(y, k, scale, shift)
    out = jax.block_until_ready(out)
    ref = _reference_forward(y, k, scale, shift)
    assert out.shape == (B, N) and out.dtype == jnp.float32
    assert jnp.allclose(out, ref, rtol=1e-5, atol=1e-5), (out, ref)

    # --- test 2: exercise a multi-tile grid (small tiles, tiny cost) ---
    B2, N2 = 16, 384
    k_y2, k_k2 = jax.random.split(k_y)
    y2 = jax.random.exponential(k_y2, (B2, N2), dtype=jnp.float32)
    k2 = jax.random.randint(k_k2, (B2, N2), 0, N_MARKS + 1, dtype=jnp.int32)

    out2 = transformed_exponential_forward(y2, k2, scale, shift,
                                           tile_b=8, tile_n=128)
    out2 = jax.block_until_ready(out2)
    ref2 = _reference_forward(y2, k2, scale, shift)
    assert out2.shape == (B2, N2)
    assert jnp.allclose(out2, ref2, rtol=1e-5, atol=1e-5)

    print("KERNEL_OK")
</pallas_src>

<mosaic_0001>
module attributes {stable_mosaic.version = 11 : i64} {
  func.func @_forward_kernel(%arg0: i32, %arg1: i32, %arg2: memref<8x128xf32, #tpu.memory_space<vmem>>, %arg3: memref<8x128xi32, #tpu.memory_space<vmem>>, %arg4: memref<4xf32, #tpu.memory_space<smem>>, %arg5: memref<4xf32, #tpu.memory_space<smem>>, %arg6: memref<8x128xf32, #tpu.memory_space<vmem>>) attributes {dimension_semantics = [#tpu.dimension_semantics<parallel>, #tpu.dimension_semantics<parallel>], iteration_bounds = array<i64: 1, 1>, scalar_prefetch = 0 : i64, scratch_operands = 0 : i64, tpu.core_type = #tpu.core_type<tc>, window_params = [{transform_indices = @transform_0, window_bounds = array<i64: 8, 128>}, {transform_indices = @transform_1, window_bounds = array<i64: 8, 128>}, {transform_indices = @transform_2, window_bounds = array<i64: 4>}, {transform_indices = @transform_3, window_bounds = array<i64: 4>}, {transform_indices = @transform_4, window_bounds = array<i64: 8, 128>}]} {
    %c0 = arith.constant 0 : index
    %c0_0 = arith.constant 0 : index
    %0 = vector.load %arg2[%c0, %c0_0] : memref<8x128xf32, #tpu.memory_space<vmem>>, vector<8x128xf32>
    %c0_1 = arith.constant 0 : index
    %c0_2 = arith.constant 0 : index
    %1 = vector.load %arg3[%c0_1, %c0_2] : memref<8x128xi32, #tpu.memory_space<vmem>>, vector<8x128xi32>
    %cst = arith.constant 1.000000e+00 : f32
    %2 = vector.broadcast %cst : f32 to vector<8x128xf32>
    %cst_3 = arith.constant 0.000000e+00 : f32
    %3 = vector.broadcast %cst_3 : f32 to vector<8x128xf32>
    %c0_i32 = arith.constant 0 : i32
    %4 = vector.broadcast %c0_i32 : i32 to vector<8x128xi32>
    %5 = arith.cmpi eq, %1, %4 : vector<8x128xi32>
    %c0_4 = arith.constant 0 : index
    %6 = memref.load %arg4[%c0_4] : memref<4xf32, #tpu.memory_space<smem>>
    %7 = vector.broadcast %6 : f32 to vector<8x128xf32>
    %8 = arith.select %5, %7, %2 : vector<8x128xi1>, vector<8x128xf32>
    %c0_5 = arith.constant 0 : index
    %9 = memref.load %arg5[%c0_5] : memref<4xf32, #tpu.memory_space<smem>>
    %10 = vector.broadcast %9 : f32 to vector<8x128xf32>
    %11 = arith.select %5, %10, %3 : vector<8x128xi1>, vector<8x128xf32>
    %c1_i32 = arith.constant 1 : i32
    %12 = vector.broadcast %c1_i32 : i32 to vector<8x128xi32>
    %13 = arith.cmpi eq, %1, %12 : vector<8x128xi32>
    %c1 = arith.constant 1 : index
    %14 = memref.load %arg4[%c1] : memref<4xf32, #tpu.memory_space<smem>>
    %15 = vector.broadcast %14 : f32 to vector<8x128xf32>
    %16 = arith.select %13, %15, %8 : vector<8x128xi1>, vector<8x128xf32>
    %c1_6 = arith.constant 1 : index
    %17 = memref.load %arg5[%c1_6] : memref<4xf32, #tpu.memory_space<smem>>
    %18 = vector.broadcast %17 : f32 to vector<8x128xf32>
    %19 = arith.select %13, %18, %11 : vector<8x128xi1>, vector<8x128xf32>
    %c2_i32 = arith.constant 2 : i32
    %20 = vector.broadcast %c2_i32 : i32 to vector<8x128xi32>
    %21 = arith.cmpi eq, %1, %20 : vector<8x128xi32>
    %c2 = arith.constant 2 : index
    %22 = memref.load %arg4[%c2] : memref<4xf32, #tpu.memory_space<smem>>
    %23 = vector.broadcast %22 : f32 to vector<8x128xf32>
    %24 = arith.select %21, %23, %16 : vector<8x128xi1>, vector<8x128xf32>
    %c2_7 = arith.constant 2 : index
    %25 = memref.load %arg5[%c2_7] : memref<4xf32, #tpu.memory_space<smem>>
    %26 = vector.broadcast %25 : f32 to vector<8x128xf32>
    %27 = arith.select %21, %26, %19 : vector<8x128xi1>, vector<8x128xf32>
    %c3_i32 = arith.constant 3 : i32
    %28 = vector.broadcast %c3_i32 : i32 to vector<8x128xi32>
    %29 = arith.cmpi eq, %1, %28 : vector<8x128xi32>
    %c3 = arith.constant 3 : index
    %30 = memref.load %arg4[%c3] : memref<4xf32, #tpu.memory_space<smem>>
    %31 = vector.broadcast %30 : f32 to vector<8x128xf32>
    %32 = arith.select %29, %31, %24 : vector<8x128xi1>, vector<8x128xf32>
    %c3_8 = arith.constant 3 : index
    %33 = memref.load %arg5[%c3_8] : memref<4xf32, #tpu.memory_space<smem>>
    %34 = vector.broadcast %33 : f32 to vector<8x128xf32>
    %35 = arith.select %29, %34, %27 : vector<8x128xi1>, vector<8x128xf32>
    %36 = arith.mulf %32, %0 : vector<8x128xf32>
    %37 = arith.addf %36, %35 : vector<8x128xf32>
    %c0_9 = arith.constant 0 : index
    %c0_10 = arith.constant 0 : index
    %38 = vector.load %arg6[%c0_9, %c0_10] : memref<8x128xf32, #tpu.memory_space<vmem>>, vector<8x128xf32>
    tpu.vector_store %arg6[%c0_9, %c0_10], %37 {strides = array<i32>} : memref<8x128xf32, #tpu.memory_space<vmem>>, vector<8x128xf32>,
    return
  }
  func.func @transform_0(%arg0: i32, %arg1: i32) -> (i32, i32) {
    %c0_i32 = arith.constant 0 : i32
    return %arg0, %arg1 : i32, i32
  }
  func.func @transform_1(%arg0: i32, %arg1: i32) -> (i32, i32) {
    %c0_i32 = arith.constant 0 : i32
    return %arg0, %arg1 : i32, i32
  }
  func.func @transform_2(%arg0: i32, %arg1: i32) -> i32 {
    %c0_i32 = arith.constant 0 : i32
    %c0_i32_0 = arith.constant 0 : i32
    return %c0_i32 : i32
  }
  func.func @transform_3(%arg0: i32, %arg1: i32) -> i32 {
    %c0_i32 = arith.constant 0 : i32
    %c0_i32_0 = arith.constant 0 : i32
    return %c0_i32 : i32
  }
  func.func @transform_4(%arg0: i32, %arg1: i32) -> (i32, i32) {
    %c0_i32 = arith.constant 0 : i32
    return %arg0, %arg1 : i32, i32
  }
}

</mosaic_0001>

<bundles_post_ra>
// kernel: tpu_custom_call.1
= control target key start
LH: loop header
LB: loop body
LE: loop exit
PB: predicated region body
PF: predicated region fallthrough
CT: control target
= control target key end

     0   :  { %9 = vsyncpa [#allocation3], 0  ;;  %s301_s0 = inlined_call_operand.hbm [shape: f32[8,128], index: 0, kind: input, shape index: {}]   ;;  %s302_s1 = inlined_call_operand.hbm [shape: s32[8,128], index: 1, kind: input, shape index: {}]   ;;  %s303_s2 = inlined_call_operand.vmem [shape: f32[4], index: 2, kind: input, shape index: {}]   ;;  %s304_s3 = inlined_call_operand.vmem [shape: f32[4], index: 3, kind: input, shape index: {}]   ;;  %s305_s4 = inlined_call_operand.hbm [shape: f32[8,128], index: 4, kind: output, shape index: {}]  }
   0x1   :  { %10 = vsyncpa [#allocation7], 0 }
   0x2   :  { %11 = vsyncpa [#allocation5], 0 }
   0x3   :  { %12 = vsyncpa [#allocation10], 0 }
   0x4   :  { %13 = vsyncpa [#allocation4], 0  ;;  %s229_s15 = smov [#allocation2]   ;;  %s230_s17 = smov [#allocation6]  }
   0x5   :  { %s20_s16 = sshll.u32 %s229_s15, 4  ;;  %s30_s18 = sshll.u32 %s230_s17, 4  ;;  %s21_s16 = int_to_ptr.vmem [resolvable:$true] %s20_s16  ;;  %s31_s18 = int_to_ptr.vmem [resolvable:$true] %s30_s18 }
   0x6   :  { %s129_s21 = scalar_lea.hbm %s301_s0, 128 }
   0x7   :  { %p130_p0 = scmp.ne.s32.totalorder %s301_s0, %s129_s21  ;;  %p133_p1 = scmp.lt.u32.totalorder %s129_s21, %s301_s0 }
   0x9   :  { %p135_p2 = pnand %p133_p1, %p130_p0 }
   0xb   :  { %138 = shalt.err (!%p135_p2)
}
   0xc   :  { %s139_s26 = scalar_lea.vmem %s21_s16, 128  ;;  %p144_p4 = scmp.lt.s32.totalorder %s21_s16, %s21_s16 }
   0xd   :  { %p140_p3 = scmp.ne.s32.totalorder %s21_s16, %s139_s26  ;;  %p145_p5 = scmp.lt.s32.totalorder %s139_s26, %s139_s26 }
   0xf   :  { %p146_p6 = por %p145_p5, %p144_p4 }
  0x11   :  { %p147_p7 = pnand %p146_p6, %p140_p3 }
  0x13   :  { %150 = shalt.err (!%p147_p7)
}
  0x14   :  { %23 = dma.hbm_to_vmem [thread:$0]  %s301_s0, 128, %s21_s16, [#allocation3]  }
  0x15   :  { %s151_s5 = scalar_lea.hbm %s302_s1, 128 }
  0x16   :  { %p152_p8 = scmp.ne.s32.totalorder %s302_s1, %s151_s5  ;;  %p155_p9 = scmp.lt.u32.totalorder %s151_s5, %s302_s1 }
  0x18   :  { %p157_p10 = pnand %p155_p9, %p152_p8 }
  0x1a   :  { %160 = shalt.err (!%p157_p10)
}
  0x1b   :  { %s161_s10 = scalar_lea.vmem %s31_s18, 128  ;;  %p166_p12 = scmp.lt.s32.totalorder %s31_s18, %s31_s18 }
  0x1c   :  { %p162_p11 = scmp.ne.s32.totalorder %s31_s18, %s161_s10  ;;  %p167_p13 = scmp.lt.s32.totalorder %s161_s10, %s161_s10 }
  0x1e   :  { %p168_p0 = por %p167_p13, %p166_p12 }
  0x20   :  { %p169_p1 = pnand %p168_p0, %p162_p11 }
  0x22   :  { %172 = shalt.err (!%p169_p1)
}
  0x23   :  { %33 = dma.hbm_to_vmem [thread:$0]  %s302_s1, 128, %s31_s18, [#allocation7]  }
  0x24   :  { %s40_s14 = sshll.u32 %s303_s2, 4  ;;  %s50_s17 = sshll.u32 %s304_s3, 4  ;;  %s41_s14 = int_to_ptr.vmem [resolvable:$true] %s40_s14  ;;  %s51_s17 = int_to_ptr.vmem [resolvable:$true] %s50_s17 }
  0x25   :  { %s173_s19 = scalar_lea.vmem %s41_s14, 16  ;;  %p178_p3 = scmp.lt.s32.totalorder %s41_s14, %s41_s14 }
  0x26   :  { %p174_p2 = scmp.ne.s32.totalorder %s41_s14, %s173_s19  ;;  %p179_p4 = scmp.lt.s32.totalorder %s173_s19, %s173_s19 }
  0x28   :  { %p180_p5 = por %p179_p4, %p178_p3 }
  0x2a   :  { %p181_p6 = pnand %p180_p5, %p174_p2 }
  0x2c   :  { %184 = shalt.err (!%p181_p6)
}
  0x2d   :  { %s231_s20 = smov [#allocation8]   ;;  %s185_s1 = scalar_lea.vmem %s51_s17, 16 }
  0x2e   :  { %43 = dma.vmem_to_smem %s41_s14, 16, %s231_s20, [#allocation5]  }
  0x2f   :  { %p186_p7 = scmp.ne.s32.totalorder %s51_s17, %s185_s1  ;;  %p190_p8 = scmp.lt.s32.totalorder %s51_s17, %s51_s17 }
  0x30   :  { %p191_p9 = scmp.lt.s32.totalorder %s185_s1, %s185_s1 }
  0x32   :  { %p192_p10 = por %p191_p9, %p190_p8 }
  0x34   :  { %p193_p11 = pnand %p192_p10, %p186_p7 }
  0x36   :  { %196 = shalt.err (!%p193_p11)
}
  0x37   :  { %s232_s2 = smov [#allocation9]  }
  0x38   :  { %53 = dma.vmem_to_smem %s51_s17, 16, %s232_s2, [#allocation10]  }
  0x39   :  { %219 = dma.done.wait [#allocation3], 128  }
  0x3a   :  { %220 = vsyncadd [#allocation3], 4294967168 }
  0x3b   :  { %221 = dma.done.wait [#allocation7], 128  }
  0x3c   :  { %222 = vsyncadd [#allocation7], 4294967168 }
  0x3d   :  { %223 = dma.done.wait [#allocation5], 16  }
  0x3e   :  { %224 = vsyncadd [#allocation5], 4294967280 }
  0x3f   :  { %225 = dma.done.wait [#allocation10], 16  }
  0x40   :  { %226 = vsyncadd [#allocation10], 4294967280 }
  0x41   :  { %66 = sfence }
  0x42   :  { %s70_s3 = sld [smem:[#allocation8]]  ;;  %v68_v0 = vld [vmem:[#allocation6] sm:$0xff]  ;;  %s118_s21 = sld [smem:[#allocation8 + $0x1]]  ;;  %v67_v7 = vld [vmem:[#allocation2] sm:$0xff] }
  0x43   :  { %s73_s18 = sld [smem:[#allocation9]]  ;;  %s119_s22 = sld [smem:[#allocation9 + $0x1]]  ;;  %vm69_vm0 = vcmp.eq.s32.totalorder %v68_v0, 0  ;;  %vm76_vm1 = vcmp.eq.s32.totalorder %v68_v0, 1  ;;  %vm83_vm2 = vcmp.eq.s32.totalorder %v68_v0, 2  ;;  %vm90_vm3 = vcmp.eq.s32.totalorder %v68_v0, 3 }
  0x44   :  { %s120_s23 = sld [smem:[#allocation8 + $0x2]]  ;;  %s122_s25 = sld [smem:[#allocation8 + $0x3]] }
  0x45   :  { %s121_s24 = sld [smem:[#allocation9 + $0x2]]  ;;  %s123_s26 = sld [smem:[#allocation9 + $0x3]] }
  0x46   :  { %s233_s27 = smov [#allocation11]  }
  0x47   :  { %s106_s28 = sshll.u32 %s233_s27, 4  ;;  %s107_s28 = int_to_ptr.vmem [resolvable:$true] %s106_s28 }
  0x48   :  { %v71_v1 = vstv %s70_s3  ;;  %v78_v5 = vstv %s118_s21  ;;  %s197_s29 = scalar_lea.vmem %s107_s28, 128  ;;  %p202_p13 = scmp.lt.s32.totalorder %s107_s28, %s107_s28 }
  0x49   :  { %v74_v2 = vstv %s73_s18  ;;  %v72_v3 = vsel %vm69_vm0, %v71_v1, 1.0  ;;  %v81_v6 = vstv %s119_s22  ;;  %p198_p12 = scmp.ne.s32.totalorder %s107_s28, %s197_s29  ;;  %p203_p0 = scmp.lt.s32.totalorder %s197_s29, %s197_s29 }
  0x4a   :  { %v75_v4 = vsel %vm69_vm0, %v74_v2, 0.0  ;;  %v79_v8 = vsel %vm76_vm1, %v78_v5, %v72_v3  ;;  %v85_v10 = vstv %s120_s23  ;;  %v92_v14 = vstv %s122_s25 }
  0x4b   :  { %v82_v9 = vsel %vm76_vm1, %v81_v6, %v75_v4  ;;  %v88_v11 = vstv %s121_s24  ;;  %v86_v12 = vsel %vm83_vm2, %v85_v10, %v79_v8  ;;  %v95_v15 = vstv %s123_s26  ;;  %p204_p1 = por %p203_p0, %p202_p13 }
  0x4c   :  { %v89_v13 = vsel %vm83_vm2, %v88_v11, %v82_v9  ;;  %v93_v16 = vsel %vm90_vm3, %v92_v14, %v86_v12 }
  0x4d   :  { %v96_v17 = vsel %vm90_vm3, %v95_v15, %v89_v13  ;;  %v97_v18 = vmul.f32 %v93_v16, %v67_v7  ;;  %p205_p2 = pnand %p204_p1, %p198_p12 }
  0x4f   :  { %v98_v19 = vadd.f32 %v97_v18, %v96_v17 }
  0x51   :  { %99 = vst [vmem:[#allocation11] sm:$0xff] %v98_v19 }
  0x52   :  { %208 = shalt.err (!%p205_p2)
}
  0x53   :  { %s209_s6 = scalar_lea.hbm %s305_s4, 128 }
  0x54   :  { %p210_p3 = scmp.ne.s32.totalorder %s305_s4, %s209_s6  ;;  %p213_p4 = scmp.lt.u32.totalorder %s209_s6, %s305_s4 }
  0x56   :  { %p215_p5 = pnand %p213_p4, %p210_p3 }
  0x58   :  { %218 = shalt.err (!%p215_p5)
}
  0x59   :  { %109 = dma.vmem_to_hbm [thread:$0]  %s107_s28, 128, %s305_s4, [#allocation4]  }
  0x5a   :  { %227 = dma.done.wait [#allocation4], 128  }
  0x5b   :  { %228 = vsyncadd [#allocation4], 4294967168 }
  0x5c   :  { %113 = vsyncpa [#allocation3], 1 }
  0x5d   :  { %114 = vsyncpa [#allocation7], 1 }
  0x5e   :  { %115 = vsyncpa [#allocation4], 1 }
  0x5f   :  { %116 = vsyncpa [#allocation5], 1 }
  0x60   :  { %117 = vsyncpa [#allocation10], 1 }

</bundles_post_ra>
